<compile_context>
chip_gen: v6e
topology: v6e:2x2x1
jax: 0.10.0
libtpu: 0.0.40
codegen_flags: <defaults>
</compile_context>

<pallas_src>
import functools

import jax
import jax.numpy as jnp
from jax.experimental import pallas as pl
from jax.experimental.pallas import tpu as pltpu

HIDDEN = 64
LANES = 128
SUBLANES = 8


def _pinn_kernel(x_ref,
                 w1_ref, b1_ref, w2_ref, b2_ref,
                 w3_ref, b3_ref, w4_ref, b4_ref,
                 o_ref, *, matmul_dtype):
    """Whole MLP hot path on-chip. Activations are (features, batch_tile):
    batch on the 128-lane axis -> full vregs for bias/tanh, unmasked vst."""

    def mm(w_ref, a):
        # MXU matmul; optional bf16 inputs, always f32 accumulation.
        return jnp.dot(w_ref[...].astype(matmul_dtype),
                       a.astype(matmul_dtype),
                       preferred_element_type=jnp.float32)

    x = x_ref[...].astype(jnp.float32)                  # (d_pad, Tb)
    h = jnp.tanh(mm(w1_ref, x) + b1_ref[...])           # (64, Tb)
    h = jnp.tanh(mm(w2_ref, h) + b2_ref[...])           # (64, Tb)
    h = jnp.tanh(mm(w3_ref, h) + b3_ref[...])           # (64, Tb)
    out = mm(w4_ref, h) + b4_ref[...]                   # (out_dim, Tb)
    o_ref[...] = out.astype(o_ref.dtype)                # lane-dense store


def _round_up(x, m):
    return (x + m - 1) // m * m


@functools.partial(jax.jit, static_argnames=("tile_b", "matmul_dtype"))
def pinn_fcn_forward(x, params, *, tile_b=4096, matmul_dtype=jnp.float32):
    """x: (N, data_dim) float32.
    params: torch-layout weights w{k}: (out, in), biases b{k}: (out, 1).
    Returns (N, output_dim)."""
    n, data_dim = x.shape
    out_dim = params["w4"].shape[0]
    assert tile_b % LANES == 0, "tile_b must be a multiple of 128 lanes"

    # Clamp the tile for small batches, then pad the batch to a tile multiple.
    tile = min(tile_b, _round_up(n, LANES))
    n_pad = _round_up(n, tile)
    # Pad the tiny feature dim up to a full sublane tile (zeros -> no-op math).
    d_pad = _round_up(data_dim, SUBLANES)

    # Batch-in-lanes layout: (d_pad, n_pad); pure layout plumbing outside the
    # kernel, padded rows/columns are zero and padded outputs get sliced off.
    xt = jnp.pad(x.T, ((0, d_pad - data_dim), (0, n_pad - n)))

    w1 = jnp.pad(params["w1"], ((0, 0), (0, d_pad - data_dim)))  # zero in-cols
    b1 = params["b1"]
    w2, b2 = params["w2"], params["b2"]
    w3, b3 = params["w3"], params["b3"]
    w4, b4 = params["w4"], params["b4"]

    def full(arr):
        # Small, grid-invariant weight/bias: same (only) block every step.
        return pl.BlockSpec(arr.shape, lambda i: (0, 0))

    grid = (n_pad // tile,)

    out_t = pl.pallas_call(
        functools.partial(_pinn_kernel, matmul_dtype=matmul_dtype),
        out_shape=jax.ShapeDtypeStruct((out_dim, n_pad), x.dtype),
        grid_spec=pltpu.PrefetchScalarGridSpec(
            num_scalar_prefetch=0,
            grid=grid,
            in_specs=[
                pl.BlockSpec((d_pad, tile), lambda i: (0, i)),   # x tile
                full(w1), full(b1),
                full(w2), full(b2),
                full(w3), full(b3),
                full(w4), full(b4),
            ],
            out_specs=pl.BlockSpec((out_dim, tile), lambda i: (0, i)),
        ),
        compiler_params=pltpu.CompilerParams(
            dimension_semantics=("parallel",)),   # megacore-shardable on v7x
    )(xt, w1, b1, w2, b2, w3, b3, w4, b4)

    # Back to batch-major (N, out_dim).
    return out_t[:, :n].T


def init_params(key, data_dim, output_dim, hidden=HIDDEN):
    """torch.nn.Linear-style init (uniform(+-1/sqrt(fan_in)) for W and b).
    Weights kept in torch layout (out_features, in_features); biases stored as
    (out_features, 1) columns so they lane-broadcast inside the kernel."""
    dims = [(data_dim, hidden), (hidden, hidden),
            (hidden, hidden), (hidden, output_dim)]
    params = {}
    for idx, (fan_in, fan_out) in enumerate(dims, start=1):
        key, kw, kb = jax.random.split(key, 3)
        bound = 1.0 / jnp.sqrt(float(fan_in))
        params[f"w{idx}"] = jax.random.uniform(
            kw, (fan_out, fan_in), jnp.float32, minval=-bound, maxval=bound)
        params[f"b{idx}"] = jax.random.uniform(
            kb, (fan_out, 1), jnp.float32, minval=-bound, maxval=bound)
    return params


def reference_forward(x, params):
    """Pure-JAX reference matching torch semantics (y = x @ W.T + b)."""
    h = jnp.tanh(x @ params["w1"].T + params["b1"].T)
    h = jnp.tanh(h @ params["w2"].T + params["b2"].T)
    h = jnp.tanh(h @ params["w3"].T + params["b3"].T)
    return h @ params["w4"].T + params["b4"].T


if __name__ == "__main__":
    # TODO(synk): only the default first_acti_name='tanh' branch is implemented
    # (the Sine variant of PINN_FCN is not exercised here).
    data_dim, output_dim = 3, 1     # e.g. PINN over (x, y, t) -> u
    batch = 200                     # not lane/tile aligned: exercises padding

    key = jax.random.PRNGKey(0)
    key, kx = jax.random.split(key)
    x = jax.random.normal(kx, (batch, data_dim), jnp.float32)
    params = init_params(key, data_dim, output_dim)

    ref = reference_forward(x, params)

    # Default (large-tile) path: tile clamps to 256 for this small batch.
    out = jax.block_until_ready(pinn_fcn_forward(x, params))
    assert out.shape == (batch, output_dim)
    assert jnp.allclose(out, ref, atol=1e-5, rtol=1e-5), "mismatch vs reference"

    # Multi-step grid path (tile_b=128 -> grid of 2) to check tiling/padding.
    out2 = jax.block_until_ready(pinn_fcn_forward(x, params, tile_b=128))
    assert jnp.allclose(out2, ref, atol=1e-5, rtol=1e-5), "tiled mismatch"

    print("KERNEL_OK")
</pallas_src>

<mosaic_0001>
module attributes {stable_mosaic.version = 11 : i64} {
  func.func @_pinn_kernel(%arg0: i32, %arg1: memref<8x256xf32, #tpu.memory_space<vmem>>, %arg2: memref<64x8xf32, #tpu.memory_space<vmem>>, %arg3: memref<64x1xf32, #tpu.memory_space<vmem>>, %arg4: memref<64x64xf32, #tpu.memory_space<vmem>>, %arg5: memref<64x1xf32, #tpu.memory_space<vmem>>, %arg6: memref<64x64xf32, #tpu.memory_space<vmem>>, %arg7: memref<64x1xf32, #tpu.memory_space<vmem>>, %arg8: memref<1x64xf32, #tpu.memory_space<vmem>>, %arg9: memref<1x1xf32, #tpu.memory_space<vmem>>, %arg10: memref<1x256xf32, #tpu.memory_space<vmem>>) attributes {dimension_semantics = [#tpu.dimension_semantics<parallel>], iteration_bounds = array<i64: 1>, scalar_prefetch = 0 : i64, scratch_operands = 0 : i64, tpu.core_type = #tpu.core_type<tc>, window_params = [{transform_indices = @transform_0, window_bounds = array<i64: 8, 256>}, {pipeline_mode = #tpu.pipeline_mode<synchronous>, transform_indices = @transform_1, window_bounds = array<i64: 64, 8>}, {pipeline_mode = #tpu.pipeline_mode<synchronous>, transform_indices = @transform_2, window_bounds = array<i64: 64, 1>}, {pipeline_mode = #tpu.pipeline_mode<synchronous>, transform_indices = @transform_3, window_bounds = array<i64: 64, 64>}, {pipeline_mode = #tpu.pipeline_mode<synchronous>, transform_indices = @transform_4, window_bounds = array<i64: 64, 1>}, {pipeline_mode = #tpu.pipeline_mode<synchronous>, transform_indices = @transform_5, window_bounds = array<i64: 64, 64>}, {pipeline_mode = #tpu.pipeline_mode<synchronous>, transform_indices = @transform_6, window_bounds = array<i64: 64, 1>}, {pipeline_mode = #tpu.pipeline_mode<synchronous>, transform_indices = @transform_7, window_bounds = array<i64: 1, 64>}, {pipeline_mode = #tpu.pipeline_mode<synchronous>, transform_indices = @transform_8, window_bounds = array<i64: 1, 1>}, {transform_indices = @transform_9, window_bounds = array<i64: 1, 256>}]} {
    %c0 = arith.constant 0 : index
    %c0_0 = arith.constant 0 : index
    %0 = vector.load %arg1[%c0, %c0_0] : memref<8x256xf32, #tpu.memory_space<vmem>>, vector<8x256xf32>
    %c0_1 = arith.constant 0 : index
    %c0_2 = arith.constant 0 : index
    %1 = vector.load %arg2[%c0_1, %c0_2] : memref<64x8xf32, #tpu.memory_space<vmem>>, vector<64x8xf32>
    %cst = arith.constant dense<0.000000e+00> : vector<64x256xf32>
    %2 = tpu.matmul %1, %0, %cst {dimension_numbers = #tpu.dot_dimension_numbers<[1], [0], [0], [1], [0, 0, 1, 1], [], []>} : vector<64x8xf32>, vector<8x256xf32>, vector<64x256xf32> -> vector<64x256xf32>
    %c0_3 = arith.constant 0 : index
    %c0_4 = arith.constant 0 : index
    %3 = vector.load %arg3[%c0_3, %c0_4] : memref<64x1xf32, #tpu.memory_space<vmem>>, vector<64x1xf32>
    %4 = vector.broadcast %3 : vector<64x1xf32> to vector<64x256xf32>
    %5 = arith.addf %2, %4 : vector<64x256xf32>
    %6 = math.tanh %5 : vector<64x256xf32>
    %c0_5 = arith.constant 0 : index
    %c0_6 = arith.constant 0 : index
    %7 = vector.load %arg4[%c0_5, %c0_6] : memref<64x64xf32, #tpu.memory_space<vmem>>, vector<64x64xf32>
    %cst_7 = arith.constant dense<0.000000e+00> : vector<64x256xf32>
    %8 = tpu.matmul %7, %6, %cst_7 {dimension_numbers = #tpu.dot_dimension_numbers<[1], [0], [0], [1], [0, 0, 1, 1], [], []>} : vector<64x64xf32>, vector<64x256xf32>, vector<64x256xf32> -> vector<64x256xf32>
    %c0_8 = arith.constant 0 : index
    %c0_9 = arith.constant 0 : index
    %9 = vector.load %arg5[%c0_8, %c0_9] : memref<64x1xf32, #tpu.memory_space<vmem>>, vector<64x1xf32>
    %10 = vector.broadcast %9 : vector<64x1xf32> to vector<64x256xf32>
    %11 = arith.addf %8, %10 : vector<64x256xf32>
    %12 = math.tanh %11 : vector<64x256xf32>
    %c0_10 = arith.constant 0 : index
    %c0_11 = arith.constant 0 : index
    %13 = vector.load %arg6[%c0_10, %c0_11] : memref<64x64xf32, #tpu.memory_space<vmem>>, vector<64x64xf32>
    %cst_12 = arith.constant dense<0.000000e+00> : vector<64x256xf32>
    %14 = tpu.matmul %13, %12, %cst_12 {dimension_numbers = #tpu.dot_dimension_numbers<[1], [0], [0], [1], [0, 0, 1, 1], [], []>} : vector<64x64xf32>, vector<64x256xf32>, vector<64x256xf32> -> vector<64x256xf32>
    %c0_13 = arith.constant 0 : index
    %c0_14 = arith.constant 0 : index
    %15 = vector.load %arg7[%c0_13, %c0_14] : memref<64x1xf32, #tpu.memory_space<vmem>>, vector<64x1xf32>
    %16 = vector.broadcast %15 : vector<64x1xf32> to vector<64x256xf32>
    %17 = arith.addf %14, %16 : vector<64x256xf32>
    %18 = math.tanh %17 : vector<64x256xf32>
    %c0_15 = arith.constant 0 : index
    %c0_16 = arith.constant 0 : index
    %19 = vector.load %arg8[%c0_15, %c0_16] : memref<1x64xf32, #tpu.memory_space<vmem>>, vector<1x64xf32>
    %cst_17 = arith.constant dense<0.000000e+00> : vector<1x256xf32>
    %20 = tpu.matmul %19, %18, %cst_17 {dimension_numbers = #tpu.dot_dimension_numbers<[1], [0], [0], [1], [0, 0, 1, 1], [], []>} : vector<1x64xf32>, vector<64x256xf32>, vector<1x256xf32> -> vector<1x256xf32>
    %c0_18 = arith.constant 0 : index
    %c0_19 = arith.constant 0 : index
    %21 = vector.load %arg9[%c0_18, %c0_19] : memref<1x1xf32, #tpu.memory_space<vmem>>, vector<1x1xf32>
    %22 = vector.broadcast %21 : vector<1x1xf32> to vector<1x256xf32>
    %23 = arith.addf %20, %22 : vector<1x256xf32>
    %c0_20 = arith.constant 0 : index
    %c0_21 = arith.constant 0 : index
    %24 = vector.load %arg10[%c0_20, %c0_21] : memref<1x256xf32, #tpu.memory_space<vmem>>, vector<1x256xf32>
    tpu.vector_store %arg10[%c0_20, %c0_21], %23 {strides = array<i32>} : memref<1x256xf32, #tpu.memory_space<vmem>>, vector<1x256xf32>,
    return
  }
  func.func @transform_0(%arg0: i32) -> (i32, i32) {
    %c0_i32 = arith.constant 0 : i32
    %c0_i32_0 = arith.constant 0 : i32
    return %c0_i32, %arg0 : i32, i32
  }
  func.func @transform_1(%arg0: i32) -> (i32, i32) {
    %c0_i32 = arith.constant 0 : i32
    %c0_i32_0 = arith.constant 0 : i32
    %c0_i32_1 = arith.constant 0 : i32
    return %c0_i32, %c0_i32_0 : i32, i32
  }
  func.func @transform_2(%arg0: i32) -> (i32, i32) {
    %c0_i32 = arith.constant 0 : i32
    %c0_i32_0 = arith.constant 0 : i32
    %c0_i32_1 = arith.constant 0 : i32
    return %c0_i32, %c0_i32_0 : i32, i32
  }
  func.func @transform_3(%arg0: i32) -> (i32, i32) {
    %c0_i32 = arith.constant 0 : i32
    %c0_i32_0 = arith.constant 0 : i32
    %c0_i32_1 = arith.constant 0 : i32
    return %c0_i32, %c0_i32_0 : i32, i32
  }
  func.func @transform_4(%arg0: i32) -> (i32, i32) {
    %c0_i32 = arith.constant 0 : i32
    %c0_i32_0 = arith.constant 0 : i32
    %c0_i32_1 = arith.constant 0 : i32
    return %c0_i32, %c0_i32_0 : i32, i32
  }
  func.func @transform_5(%arg0: i32) -> (i32, i32) {
    %c0_i32 = arith.constant 0 : i32
    %c0_i32_0 = arith.constant 0 : i32
    %c0_i32_1 = arith.constant 0 : i32
    return %c0_i32, %c0_i32_0 : i32, i32
  }
  func.func @transform_6(%arg0: i32) -> (i32, i32) {
    %c0_i32 = arith.constant 0 : i32
    %c0_i32_0 = arith.constant 0 : i32
    %c0_i32_1 = arith.constant 0 : i32
    return %c0_i32, %c0_i32_0 : i32, i32
  }
  func.func @transform_7(%arg0: i32) -> (i32, i32) {
    %c0_i32 = arith.constant 0 : i32
    %c0_i32_0 = arith.constant 0 : i32
    %c0_i32_1 = arith.constant 0 : i32
    return %c0_i32, %c0_i32_0 : i32, i32
  }
  func.func @transform_8(%arg0: i32) -> (i32, i32) {
    %c0_i32 = arith.constant 0 : i32
    %c0_i32_0 = arith.constant 0 : i32
    %c0_i32_1 = arith.constant 0 : i32
    return %c0_i32, %c0_i32_0 : i32, i32
  }
  func.func @transform_9(%arg0: i32) -> (i32, i32) {
    %c0_i32 = arith.constant 0 : i32
    %c0_i32_0 = arith.constant 0 : i32
    return %c0_i32, %arg0 : i32, i32
  }
}

</mosaic_0001>

<bundles_post_ra>
// kernel: pinn_fcn_forward.1
= control target key start
LH: loop header
LB: loop body
LE: loop exit
PB: predicated region body
PF: predicated region fallthrough
CT: control target
= control target key end

     0   :  { %v905_v2 = vmov 0.0   ;;  %vm92_vm0 = vcmask 64512   ;;  %v906_v10 = vmov 0   ;;  %vm302_vm1 = vcmask 523264   ;;  %s1167_s0 = inlined_call_operand.vmem [shape: f32[8,256], index: 0, kind: input, shape index: {}]   ;;  %s1168_s1 = inlined_call_operand.vmem [shape: f32[64,8], index: 1, kind: input, shape index: {}]   ;;  %s1169_s8 = inlined_call_operand.<no memory space> [shape: f32[1,1], index: 8, kind: input, shape index: {}]   ;;  %s1170_s2 = inlined_call_operand.vmem [shape: f32[64,1], index: 2, kind: input, shape index: {}]   ;;  %s1171_s4 = inlined_call_operand.vmem [shape: f32[64,1], index: 4, kind: input, shape index: {}]   ;;  %s1172_s6 = inlined_call_operand.vmem [shape: f32[64,1], index: 6, kind: input, shape index: {}]   ;;  %s1173_s3 = inlined_call_operand.vmem [shape: f32[64,64], index: 3, kind: input, shape index: {}]   ;;  %s1174_s5 = inlined_call_operand.vmem [shape: f32[64,64], index: 5, kind: input, shape index: {}]   ;;  %s1175_s7 = inlined_call_operand.vmem [shape: f32[1,64], index: 7, kind: input, shape index: {}]   ;;  %s1176_s9 = inlined_call_operand.vmem [shape: f32[1,256], index: 9, kind: output, shape index: {}]  }
   0x1   :  { %v35_v0 = vld [vmem:[%s1167_s0 + $0x8] sm:$0xff]  ;;  %v34_v1 = vld [vmem:[%s1167_s0] sm:$0xff]  ;;  %181 = vmatprep.mubr.f32.mxu0 %v905_v2  ;;  %205 = vmatprep.mubr.f32.mxu1 %v905_v2  ;;  %v14_v4 = vstv %s1169_s8  ;;  %v51_v6 = vld [vmem:[%s1170_s2 + $0x38] sm:$0xff] }
   0x2   :  { %v36_v3 = vld [vmem:[%s1168_s1] sm:$0xff]  ;;  %147 = vmatprep.subr.mxu0 %v35_v0  ;;  %802 = vmatprep.subr.mxu1 %v35_v0  ;;  %15 = vst [vmem:[#allocation2] sm:$0x1] %v14_v4  ;;  %v37_v7 = vld [vmem:[%s1168_s1 + $0x8] sm:$0xff]  ;;  %v50_v11 = vld [vmem:[%s1170_s2 + $0x30] sm:$0xff] }
   0x3   :  { %v40_v5 = vld [vmem:[%s1168_s1 + $0x20] sm:$0xff]  ;;  %148 = vmatpush1.msra.mxu0 %v34_v1  ;;  %803 = vmatpush1.msra.mxu1 %v34_v1  ;;  %v41_v8 = vld [vmem:[%s1168_s1 + $0x28] sm:$0xff]  ;;  %v38_v13 = vld [vmem:[%s1168_s1 + $0x10] sm:$0xff] }
   0x4   :  { %777 = vmatmul.mubr.msk.f32.vlgmr.msra.gmra.mxu0 %vm92_vm0, %v36_v3  ;;  %781 = vmatmul.mubr.msk.f32.vlgmr.msra.gmra.mxu1 %vm92_vm0, %v40_v5  ;;  %v49_v9 = vld [vmem:[%s1170_s2 + $0x28] sm:$0xff]  ;;  %v48_v12 = vld [vmem:[%s1170_s2 + $0x20] sm:$0xff]  ;;  %v42_v14 = vld [vmem:[%s1168_s1 + $0x30] sm:$0xff] }
   0x5   :  { %187 = vmatprep.mubr.f32.mxu0 %v905_v2  ;;  %211 = vmatprep.mubr.f32.mxu1 %v905_v2  ;;  %v47_v15 = vld [vmem:[%s1170_s2 + $0x18] sm:$0xff]  ;;  %v46_v16 = vld [vmem:[%s1170_s2 + $0x10] sm:$0xff]  ;;  %v45_v19 = vld [vmem:[%s1170_s2 + $0x8] sm:$0xff] }
   0x6   :  { %807 = vset.pattern.permute.xlu0 %v906_v10  ;;  %808 = vset.pattern.permute.xlu1 %v906_v10  ;;  %v39_v17 = vld [vmem:[%s1168_s1 + $0x18] sm:$0xff]  ;;  %v44_v20 = vld [vmem:[%s1170_s2] sm:$0xff]  ;;  %v260_v22 = vld [vmem:[%s1171_s4 + $0x30] sm:$0xff] }
   0x7   :  { %89 = vperm.xlu0 %807, %v51_v6   ;;  %79 = vperm.xlu1 %808, %v49_v9   ;;  %v43_v18 = vld [vmem:[%s1168_s1 + $0x38] sm:$0xff]  ;;  %v259_v23 = vld [vmem:[%s1171_s4 + $0x28] sm:$0xff]  ;;  %v258_v24 = vld [vmem:[%s1171_s4 + $0x20] sm:$0xff] }
   0x8   :  { %778 = vmatmul.mubr.msk.f32.gmra.mxu0 %vm92_vm0, %v37_v7  ;;  %782 = vmatmul.mubr.msk.f32.gmra.mxu1 %vm92_vm0, %v41_v8  ;;  %v261_v21 = vld [vmem:[%s1171_s4 + $0x38] sm:$0xff]  ;;  %v256_v26 = vld [vmem:[%s1171_s4 + $0x10] sm:$0xff]  ;;  %v255_v27 = vld [vmem:[%s1171_s4 + $0x8] sm:$0xff] }
   0x9   :  { %193 = vmatprep.mubr.f32.mxu0 %v905_v2  ;;  %217 = vmatprep.mubr.f32.mxu1 %v905_v2  ;;  %v257_v25 = vld [vmem:[%s1171_s4 + $0x18] sm:$0xff]  ;;  %v254_v28 = vld [vmem:[%s1171_s4] sm:$0xff]  ;;  %v470_v30 = vld [vmem:[%s1172_s6 + $0x30] sm:$0xff] }
   0xa   :  { %v471_v29 = vld [vmem:[%s1172_s6 + $0x38] sm:$0xff]  ;;  %v469_v31 = vld [vmem:[%s1172_s6 + $0x28] sm:$0xff]  ;;  %v468_v32 = vld [vmem:[%s1172_s6 + $0x20] sm:$0xff] }
   0xb   :  { %84 = vperm.xlu0 %807, %v50_v11   ;;  %74 = vperm.xlu1 %808, %v48_v12   ;;  %v467_v33 = vld [vmem:[%s1172_s6 + $0x18] sm:$0xff]  ;;  %v466_v34 = vld [vmem:[%s1172_s6 + $0x10] sm:$0xff]  ;;  %v465_v35 = vld [vmem:[%s1172_s6 + $0x8] sm:$0xff] }
   0xc   :  { %779 = vmatmul.mubr.msk.f32.gmra.mxu0 %vm92_vm0, %v38_v13  ;;  %783 = vmatmul.mubr.msk.f32.gmra.mxu1 %vm92_vm0, %v42_v14  ;;  %v464_v36 = vld [vmem:[%s1172_s6] sm:$0xff] }
   0xd   :  { %199 = vmatprep.mubr.f32.mxu0 %v905_v2  ;;  %223 = vmatprep.mubr.f32.mxu1 %v905_v2  ;;  %v666_v37 = vld [vmem:[#allocation2] sm:$0x1] }
   0xf   :  { %69 = vperm.xlu0 %807, %v47_v15   ;;  %64 = vperm.xlu1 %808, %v46_v16  }
  0x10   :  { %780 = vmatmul.mubr.msk.f32.gmra.mxu0 %vm92_vm0, %v39_v17  ;;  %784 = vmatmul.mubr.msk.f32.gmra.mxu1 %vm92_vm0, %v43_v18 }
  0x11   :  { %391 = vmatprep.mubr.f32.mxu1 %v905_v2  ;;  %600 = vmatprep.mubr.f32.mxu0 %v905_v2 }
  0x13   :  { %59 = vperm.xlu0 %807, %v45_v19   ;;  %54 = vperm.xlu1 %808, %v44_v20  }
  0x17   :  { %299 = vperm.xlu0 %807, %v261_v21   ;;  %294 = vperm.xlu1 %808, %v260_v22  }
  0x1b   :  { %289 = vperm.xlu0 %807, %v259_v23   ;;  %284 = vperm.xlu1 %808, %v258_v24  }
  0x1f   :  { %279 = vperm.xlu0 %807, %v257_v25   ;;  %274 = vperm.xlu1 %808, %v256_v26  }
  0x23   :  { %269 = vperm.xlu0 %807, %v255_v27   ;;  %264 = vperm.xlu1 %808, %v254_v28  }
  0x27   :  { %509 = vperm.xlu0 %807, %v471_v29   ;;  %504 = vperm.xlu1 %808, %v470_v30   ;;  %v246_v30 = vld [vmem:[%s1173_s3] sm:$0xff] }
  0x2b   :  { %499 = vperm.xlu0 %807, %v469_v31   ;;  %494 = vperm.xlu1 %808, %v468_v32   ;;  %v247_v32 = vld [vmem:[%s1173_s3 + $0x8] sm:$0xff] }
  0x2f   :  { %489 = vperm.xlu0 %807, %v467_v33   ;;  %484 = vperm.xlu1 %808, %v466_v34   ;;  %v248_v33 = vld [vmem:[%s1173_s3 + $0x10] sm:$0xff]  ;;  %v249_v34 = vld [vmem:[%s1173_s3 + $0x18] sm:$0xff] }
  0x33   :  { %479 = vperm.xlu0 %807, %v465_v35   ;;  %474 = vperm.xlu1 %808, %v464_v36   ;;  %v250_v35 = vld [vmem:[%s1173_s3 + $0x20] sm:$0xff]  ;;  %v251_v36 = vld [vmem:[%s1173_s3 + $0x28] sm:$0xff] }
  0x37   :  { %669 = vperm.xlu0 %807, %v666_v37   ;;  %v252_v37 = vld [vmem:[%s1173_s3 + $0x30] sm:$0xff] }
  0x82   :  { %v90_v46 = vpop.permute.xlu0 %89  ;;  %v80_v49 = vpop.permute.xlu1 %79 }
  0x86   :  { %v85_v53 = vpop.permute.xlu0 %84  ;;  %v75_v55 = vpop.permute.xlu1 %74 }
  0x8a   :  { %v70_v62 = vpop.permute.xlu0 %69  ;;  %v65_v3 = vpop.permute.xlu1 %64 }
  0x8e   :  { %v60_v8 = vpop.permute.xlu0 %59  ;;  %v55_v11 = vpop.permute.xlu1 %54 }
  0xc4   :  { %v183_v38 = vpop.f32.mrf.mxu0  ;;  %v207_v39 = vpop.f32.mrf.mxu1 }
  0xc5   :  { %v208_v4 = vadd.f32 %v207_v39, %v75_v55  ;;  %v184_v14 = vadd.f32 %v183_v38, %v55_v11  ;;  %v253_v38 = vld [vmem:[%s1173_s3 + $0x38] sm:$0xff] }
  0xc6   :  { %v185_v40 = vpop.f32.mrf.mxu0  ;;  %v209_v41 = vpop.f32.mrf.mxu1 }
  0xc7   :  { %v210_v1 = vadd.f32 %v209_v41, %v75_v55  ;;  %v186_v13 = vadd.f32 %v185_v40, %v55_v11 }
  0xc8   :  { %v189_v42 = vpop.f32.mrf.mxu0  ;;  %v213_v43 = vpop.f32.mrf.mxu1 }
  0xc9   :  { %v214_v63 = vadd.f32 %v213_v43, %v80_v49  ;;  %v190_v12 = vadd.f32 %v189_v42, %v60_v8 }
  0xca   :  { %v191_v44 = vpop.f32.mrf.mxu0  ;;  %v215_v45 = vpop.f32.mrf.mxu1 }
  0xcb   :  { %v216_v61 = vadd.f32 %v215_v45, %v80_v49  ;;  %v192_v10 = vadd.f32 %v191_v44, %v60_v8 }
  0xcc   :  { %v195_v47 = vpop.f32.mrf.mxu0  ;;  %v219_v48 = vpop.f32.mrf.mxu1 }
  0xcd   :  { %v220_v60 = vadd.f32 %v219_v48, %v85_v53  ;;  %v196_v9 = vadd.f32 %v195_v47, %v65_v3 }
  0xce   :  { %v221_v50 = vpop.f32.mrf.mxu1  ;;  %v197_v51 = vpop.f32.mrf.mxu0 }
  0xcf   :  { %v222_v59 = vadd.f32 %v221_v50, %v85_v53  ;;  %v198_v7 = vadd.f32 %v197_v51, %v65_v3  ;;  %v300_v50 = vpop.permute.xlu0 %299 }
  0xd0   :  { %v225_v52 = vpop.f32.mrf.mxu1  ;;  %v201_v56 = vpop.f32.mrf.mxu0 }
  0xd1   :  { %v226_v57 = vadd.f32 %v225_v52, %v90_v46  ;;  %v202_v6 = vadd.f32 %v201_v56, %v70_v62  ;;  %v295_v52 = vpop.permute.xlu1 %294 }
  0xd2   :  { %v227_v54 = vpop.f32.mrf.mxu1  ;;  %v203_v0 = vpop.f32.mrf.mxu0 }
  0xd3   :  { %v228_v58 = vadd.f32 %v227_v54, %v90_v46  ;;  %v204_v5 = vadd.f32 %v203_v0, %v70_v62  ;;  %v290_v55 = vpop.permute.xlu0 %289 }
  0xd5   :  { %809 = vtanh.f32 %v228_v58 }
  0xd6   :  { %811 = vtanh.f32 %v226_v57  ;;  %v285_v57 = vpop.permute.xlu1 %284 }
  0xd7   :  { %813 = vtanh.f32 %v222_v59  ;;  %v280_v0 = vpop.permute.xlu0 %279 }
  0xd8   :  { %815 = vtanh.f32 %v220_v60 }
  0xd9   :  { %817 = vtanh.f32 %v216_v61 }
  0xda   :  { %819 = vtanh.f32 %v214_v63 }
  0xdb   :  { %821 = vtanh.f32 %v210_v1 }
  0xdc   :  { %823 = vtanh.f32 %v208_v4  ;;  %v275_v4 = vpop.permute.xlu1 %274 }
  0xdd   :  { %825 = vtanh.f32 %v204_v5 }
  0xde   :  { %827 = vtanh.f32 %v202_v6 }
  0xdf   :  { %829 = vtanh.f32 %v198_v7 }
  0xe0   :  { %831 = vtanh.f32 %v196_v9  ;;  %v270_v9 = vpop.permute.xlu0 %269 }
  0xe1   :  { %833 = vtanh.f32 %v192_v10 }
  0xe2   :  { %v810_v15 = vpop.eup %809  ;;  %835 = vtanh.f32 %v190_v12  ;;  %v265_v12 = vpop.permute.xlu1 %264 }
  0xe3   :  { %v812_v16 = vpop.eup %811  ;;  %837 = vtanh.f32 %v186_v13  ;;  %343 = vmatprep.subr.mxu1 %v810_v15 }
  0xe4   :  { %v814_v17 = vpop.eup %813  ;;  %839 = vtanh.f32 %v184_v14  ;;  %344 = vmatpush1.msra.mxu1 %v812_v16 }
  0xe5   :  { %v816_v18 = vpop.eup %815  ;;  %345 = vmatprep.subr.mxu1 %v814_v17 }
  0xe6   :  { %v818_v19 = vpop.eup %817  ;;  %346 = vmatpush1.msra.mxu1 %v816_v18 }
  0xe7   :  { %v820_v20 = vpop.eup %819  ;;  %347 = vmatprep.subr.mxu1 %v818_v19 }
  0xe8   :  { %v822_v21 = vpop.eup %821  ;;  %348 = vmatpush1.msra.mxu1 %v820_v20 }
  0xe9   :  { %v824_v22 = vpop.eup %823  ;;  %349 = vmatprep.subr.mxu1 %v822_v21 }
  0xea   :  { %v826_v23 = vpop.eup %825  ;;  %350 = vmatpush1.msra.mxu1 %v824_v22 }
  0xeb   :  { %v828_v24 = vpop.eup %827  ;;  %351 = vmatprep.subr.mxu1 %v826_v23 }
  0xec   :  { %v830_v25 = vpop.eup %829  ;;  %352 = vmatpush1.msra.mxu1 %v828_v24 }
  0xed   :  { %v832_v26 = vpop.eup %831  ;;  %353 = vmatprep.subr.mxu1 %v830_v25 }
  0xee   :  { %v834_v27 = vpop.eup %833  ;;  %354 = vmatpush1.msra.mxu1 %v832_v26 }
  0xef   :  { %v836_v28 = vpop.eup %835  ;;  %355 = vmatprep.subr.mxu1 %v834_v27 }
  0xf0   :  { %v838_v29 = vpop.eup %837  ;;  %356 = vmatpush1.msra.mxu1 %v836_v28 }
  0xf1   :  { %v840_v31 = vpop.eup %839  ;;  %357 = vmatprep.subr.mxu1 %v838_v29 }
  0xf2   :  { %358 = vmatpush1.msra.mxu1 %v840_v31  ;;  %v456_v31 = vld [vmem:[%s1174_s5] sm:$0xff] }
  0xf3   :  { %785 = vmatmul.mubr.msk.f32.vlgmr.msra.gmra.mxu1 %vm302_vm1, %v246_v30 }
  0xf4   :  { %397 = vmatprep.mubr.f32.mxu1 %v905_v2 }
  0xf7   :  { %786 = vmatmul.mubr.msk.f32.gmra.mxu1 %vm302_vm1, %v247_v32 }
  0xf8   :  { %403 = vmatprep.mubr.f32.mxu1 %v905_v2 }
  0xfb   :  { %787 = vmatmul.mubr.msk.f32.gmra.mxu1 %vm302_vm1, %v248_v33  ;;  %v457_v33 = vld [vmem:[%s1174_s5 + $0x8] sm:$0xff] }
  0xfc   :  { %409 = vmatprep.mubr.f32.mxu1 %v905_v2 }
  0xff   :  { %788 = vmatmul.mubr.msk.f32.gmra.mxu1 %vm302_vm1, %v249_v34  ;;  %v458_v34 = vld [vmem:[%s1174_s5 + $0x10] sm:$0xff] }
 0x100   :  { %415 = vmatprep.mubr.f32.mxu1 %v905_v2 }
 0x103   :  { %789 = vmatmul.mubr.msk.f32.gmra.mxu1 %vm302_vm1, %v250_v35  ;;  %v459_v35 = vld [vmem:[%s1174_s5 + $0x18] sm:$0xff] }
 0x104   :  { %421 = vmatprep.mubr.f32.mxu1 %v905_v2 }
 0x107   :  { %790 = vmatmul.mubr.msk.f32.gmra.mxu1 %vm302_vm1, %v251_v36  ;;  %v460_v36 = vld [vmem:[%s1174_s5 + $0x20] sm:$0xff] }
 0x108   :  { %427 = vmatprep.mubr.f32.mxu1 %v905_v2 }
 0x10b   :  { %791 = vmatmul.mubr.msk.f32.gmra.mxu1 %vm302_vm1, %v252_v37  ;;  %v461_v37 = vld [vmem:[%s1174_s5 + $0x28] sm:$0xff] }
 0x10c   :  { %433 = vmatprep.mubr.f32.mxu1 %v905_v2 }
 0x10f   :  { %792 = vmatmul.mubr.msk.f32.gmra.mxu1 %vm302_vm1, %v253_v38  ;;  %v462_v38 = vld [vmem:[%s1174_s5 + $0x30] sm:$0xff] }
 0x110   :  { %743 = vmatprep.mubr.f32.mxu1 %v905_v2 }
 0x1b3   :  { %v393_v39 = vpop.f32.mrf.mxu1 }
 0x1b4   :  { %v394_v15 = vadd.f32 %v393_v39, %v265_v12  ;;  %v463_v39 = vld [vmem:[%s1174_s5 + $0x38] sm:$0xff] }
 0x1b5   :  { %v395_v40 = vpop.f32.mrf.mxu1 }
 0x1b6   :  { %v396_v14 = vadd.f32 %v395_v40, %v265_v12 }
 0x1b7   :  { %v399_v41 = vpop.f32.mrf.mxu1 }
 0x1b8   :  { %v400_v13 = vadd.f32 %v399_v41, %v270_v9 }
 0x1b9   :  { %v401_v42 = vpop.f32.mrf.mxu1 }
 0x1ba   :  { %v402_v11 = vadd.f32 %v401_v42, %v270_v9 }
 0x1bb   :  { %v405_v43 = vpop.f32.mrf.mxu1 }
 0x1bc   :  { %v406_v10 = vadd.f32 %v405_v43, %v275_v4 }
 0x1bd   :  { %v407_v44 = vpop.f32.mrf.mxu1 }
 0x1be   :  { %v408_v8 = vadd.f32 %v407_v44, %v275_v4 }
 0x1bf   :  { %v411_v45 = vpop.f32.mrf.mxu1 }
 0x1c0   :  { %v412_v7 = vadd.f32 %v411_v45, %v280_v0 }
 0x1c1   :  { %v413_v46 = vpop.f32.mrf.mxu1 }
 0x1c2   :  { %v414_v6 = vadd.f32 %v413_v46, %v280_v0 }
 0x1c3   :  { %v417_v47 = vpop.f32.mrf.mxu1 }
 0x1c4   :  { %v418_v5 = vadd.f32 %v417_v47, %v285_v57 }
 0x1c5   :  { %v419_v48 = vpop.f32.mrf.mxu1 }
 0x1c6   :  { %v420_v3 = vadd.f32 %v419_v48, %v285_v57 }
 0x1c7   :  { %v423_v49 = vpop.f32.mrf.mxu1 }
 0x1c8   :  { %v424_v1 = vadd.f32 %v423_v49, %v290_v55 }
 0x1c9   :  { %v425_v51 = vpop.f32.mrf.mxu1 }
 0x1ca   :  { %v426_v63 = vadd.f32 %v425_v51, %v290_v55  ;;  %v510_v51 = vpop.permute.xlu0 %509 }
 0x1cb   :  { %v429_v53 = vpop.f32.mrf.mxu1 }
 0x1cc   :  { %v430_v62 = vadd.f32 %v429_v53, %v295_v52 }
 0x1cd   :  { %v431_v54 = vpop.f32.mrf.mxu1 }
 0x1ce   :  { %v432_v60 = vadd.f32 %v431_v54, %v295_v52  ;;  %v500_v55 = vpop.permute.xlu0 %499 }
 0x1cf   :  { %v435_v56 = vpop.f32.mrf.mxu1 }
 0x1d0   :  { %v436_v58 = vadd.f32 %v435_v56, %v300_v50 }
 0x1d1   :  { %v437_v59 = vpop.f32.mrf.mxu1 }
 0x1d2   :  { %v438_v61 = vadd.f32 %v437_v59, %v300_v50  ;;  %v490_v0 = vpop.permute.xlu0 %489 }
 0x1d4   :  { %841 = vtanh.f32 %v438_v61 }
 0x1d5   :  { %843 = vtanh.f32 %v436_v58 }
 0x1d6   :  { %845 = vtanh.f32 %v432_v60  ;;  %v480_v9 = vpop.permute.xlu0 %479 }
 0x1d7   :  { %847 = vtanh.f32 %v430_v62 }
 0x1d8   :  { %849 = vtanh.f32 %v426_v63 }
 0x1d9   :  { %851 = vtanh.f32 %v424_v1 }
 0x1da   :  { %853 = vtanh.f32 %v420_v3 }
 0x1db   :  { %855 = vtanh.f32 %v418_v5 }
 0x1dc   :  { %857 = vtanh.f32 %v414_v6 }
 0x1dd   :  { %859 = vtanh.f32 %v412_v7 }
 0x1de   :  { %861 = vtanh.f32 %v408_v8 }
 0x1df   :  { %863 = vtanh.f32 %v406_v10 }
 0x1e0   :  { %865 = vtanh.f32 %v402_v11 }
 0x1e1   :  { %v842_v16 = vpop.eup %841  ;;  %867 = vtanh.f32 %v400_v13 }
 0x1e2   :  { %v844_v17 = vpop.eup %843  ;;  %869 = vtanh.f32 %v396_v14  ;;  %552 = vmatprep.subr.mxu0 %v842_v16 }
 0x1e3   :  { %v846_v18 = vpop.eup %845  ;;  %871 = vtanh.f32 %v394_v15  ;;  %553 = vmatpush1.msra.mxu0 %v844_v17 }
 0x1e4   :  { %v848_v19 = vpop.eup %847  ;;  %554 = vmatprep.subr.mxu0 %v846_v18 }
 0x1e5   :  { %v850_v20 = vpop.eup %849  ;;  %555 = vmatpush1.msra.mxu0 %v848_v19 }
 0x1e6   :  { %v852_v21 = vpop.eup %851  ;;  %556 = vmatprep.subr.mxu0 %v850_v20 }
 0x1e7   :  { %v854_v22 = vpop.eup %853  ;;  %557 = vmatpush1.msra.mxu0 %v852_v21 }
 0x1e8   :  { %v856_v23 = vpop.eup %855  ;;  %558 = vmatprep.subr.mxu0 %v854_v22 }
 0x1e9   :  { %v858_v24 = vpop.eup %857  ;;  %559 = vmatpush1.msra.mxu0 %v856_v23 }
 0x1ea   :  { %v860_v25 = vpop.eup %859  ;;  %560 = vmatprep.subr.mxu0 %v858_v24 }
 0x1eb   :  { %v862_v26 = vpop.eup %861  ;;  %561 = vmatpush1.msra.mxu0 %v860_v25 }
 0x1ec   :  { %v864_v27 = vpop.eup %863  ;;  %562 = vmatprep.subr.mxu0 %v862_v26 }
 0x1ed   :  { %v866_v28 = vpop.eup %865  ;;  %563 = vmatpush1.msra.mxu0 %v864_v27 }
 0x1ee   :  { %v868_v29 = vpop.eup %867  ;;  %564 = vmatprep.subr.mxu0 %v866_v28 }
 0x1ef   :  { %v870_v30 = vpop.eup %869  ;;  %565 = vmatpush1.msra.mxu0 %v868_v29 }
 0x1f0   :  { %v872_v32 = vpop.eup %871  ;;  %566 = vmatprep.subr.mxu0 %v870_v30 }
 0x1f1   :  { %567 = vmatpush1.msra.mxu0 %v872_v32 }
 0x1f2   :  { %793 = vmatmul.mubr.msk.f32.vlgmr.msra.gmra.mxu0 %vm302_vm1, %v456_v31  ;;  %v665_v31 = vld [vmem:[%s1175_s7] sm:$0x1] }
 0x1f3   :  { %606 = vmatprep.mubr.f32.mxu0 %v905_v2 }
 0x1f6   :  { %794 = vmatmul.mubr.msk.f32.gmra.mxu0 %vm302_vm1, %v457_v33  ;;  %v672_v33 = vlaneseq }
 0x1f7   :  { %612 = vmatprep.mubr.f32.mxu0 %v905_v2 }
 0x1f8   :  { %vm770_vm2 = vcmp.lt.s32.totalorder %v672_v33, 256 }
 0x1fa   :  { %795 = vmatmul.mubr.msk.f32.gmra.mxu0 %vm302_vm1, %v458_v34  ;;  %v673_v34 = vshrl.u32 %v672_v33, 7 }
 0x1fb   :  { %618 = vmatprep.mubr.f32.mxu0 %v905_v2 }
 0x1fe   :  { %796 = vmatmul.mubr.msk.f32.gmra.mxu0 %vm302_vm1, %v459_v35  ;;  %v907_v35 = vmov 1966171168  }
 0x1ff   :  { %624 = vmatprep.mubr.f32.mxu0 %v905_v2 }
 0x202   :  { %797 = vmatmul.mubr.msk.f32.gmra.mxu0 %vm302_vm1, %v460_v36  ;;  %v754_v36 = vunpack.c.l.s4 %v907_v35 }
 0x203   :  { %630 = vmatprep.mubr.f32.mxu0 %v905_v2 }
 0x206   :  { %798 = vmatmul.mubr.msk.f32.gmra.mxu0 %vm302_vm1, %v461_v37  ;;  %v674_v37 = vsub.s32 0, %v673_v34 }
 0x207   :  { %636 = vmatprep.mubr.f32.mxu0 %v905_v2 }
 0x20a   :  { %799 = vmatmul.mubr.msk.f32.gmra.mxu0 %vm302_vm1, %v462_v38  ;;  %v670_v38 = vpop.permute.xlu0 %669 }
 0x20b   :  { %642 = vmatprep.mubr.f32.mxu0 %v905_v2  ;;  %v505_v2 = vpop.permute.xlu1 %504 }
 0x20e   :  { %800 = vmatmul.mubr.msk.f32.gmra.mxu0 %vm302_vm1, %v463_v39  ;;  %v755_v39 = vunpack.c.0.s8 %v754_v36 }
 0x20f   :  { %v495_v57 = vpop.permute.xlu1 %494 }
 0x213   :  { %v485_v4 = vpop.permute.xlu1 %484 }
 0x217   :  { %v475_v12 = vpop.permute.xlu1 %474 }
 0x2b2   :  { %v602_v40 = vpop.f32.mrf.mxu0 }
 0x2b3   :  { %v603_v15 = vadd.f32 %v602_v40, %v475_v12 }
 0x2b4   :  { %v604_v41 = vpop.f32.mrf.mxu0 }
 0x2b5   :  { %v605_v14 = vadd.f32 %v604_v41, %v475_v12  ;;  %v675_v41 = vrot.slane %v670_v38, %v674_v37 }
 0x2b6   :  { %v608_v42 = vpop.f32.mrf.mxu0 }
 0x2b7   :  { %v609_v13 = vadd.f32 %v608_v42, %v480_v9 }
 0x2b8   :  { %v610_v43 = vpop.f32.mrf.mxu0 }
 0x2b9   :  { %v611_v11 = vadd.f32 %v610_v43, %v480_v9 }
 0x2ba   :  { %v614_v44 = vpop.f32.mrf.mxu0 }
 0x2bb   :  { %v615_v10 = vadd.f32 %v614_v44, %v485_v4 }
 0x2bc   :  { %v616_v45 = vpop.f32.mrf.mxu0 }
 0x2bd   :  { %v617_v8 = vadd.f32 %v616_v45, %v485_v4  ;;  %v758_v45 = vsub.s32 %v755_v39, %v673_v34 }
 0x2be   :  { %v620_v46 = vpop.f32.mrf.mxu0 }
 0x2bf   :  { %v621_v7 = vadd.f32 %v620_v46, %v490_v0 }
 0x2c0   :  { %v622_v47 = vpop.f32.mrf.mxu0 }
 0x2c1   :  { %v623_v6 = vadd.f32 %v622_v47, %v490_v0 }
 0x2c2   :  { %v626_v48 = vpop.f32.mrf.mxu0 }
 0x2c3   :  { %v627_v5 = vadd.f32 %v626_v48, %v495_v57 }
 0x2c4   :  { %v628_v49 = vpop.f32.mrf.mxu0 }
 0x2c5   :  { %v629_v3 = vadd.f32 %v628_v49, %v495_v57 }
 0x2c6   :  { %v632_v50 = vpop.f32.mrf.mxu0 }
 0x2c7   :  { %v633_v1 = vadd.f32 %v632_v50, %v500_v55 }
 0x2c8   :  { %v634_v52 = vpop.f32.mrf.mxu0 }
 0x2c9   :  { %v635_v63 = vadd.f32 %v634_v52, %v500_v55 }
 0x2ca   :  { %v638_v53 = vpop.f32.mrf.mxu0 }
 0x2cb   :  { %v639_v62 = vadd.f32 %v638_v53, %v505_v2 }
 0x2cc   :  { %v640_v54 = vpop.f32.mrf.mxu0 }
 0x2cd   :  { %v641_v60 = vadd.f32 %v640_v54, %v505_v2 }
 0x2ce   :  { %v644_v56 = vpop.f32.mrf.mxu0 }
 0x2cf   :  { %v645_v58 = vadd.f32 %v644_v56, %v510_v51 }
 0x2d0   :  { %v646_v59 = vpop.f32.mrf.mxu0 }
 0x2d1   :  { %v647_v61 = vadd.f32 %v646_v59, %v510_v51 }
 0x2d3   :  { %873 = vtanh.f32 %v647_v61 }
 0x2d4   :  { %875 = vtanh.f32 %v645_v58 }
 0x2d5   :  { %877 = vtanh.f32 %v641_v60 }
 0x2d6   :  { %879 = vtanh.f32 %v639_v62 }
 0x2d7   :  { %881 = vtanh.f32 %v635_v63 }
 0x2d8   :  { %883 = vtanh.f32 %v633_v1 }
 0x2d9   :  { %885 = vtanh.f32 %v629_v3 }
 0x2da   :  { %887 = vtanh.f32 %v627_v5 }
 0x2db   :  { %889 = vtanh.f32 %v623_v6 }
 0x2dc   :  { %891 = vtanh.f32 %v621_v7 }
 0x2dd   :  { %893 = vtanh.f32 %v617_v8 }
 0x2de   :  { %895 = vtanh.f32 %v615_v10 }
 0x2df   :  { %897 = vtanh.f32 %v611_v11 }
 0x2e0   :  { %v874_v16 = vpop.eup %873  ;;  %899 = vtanh.f32 %v609_v13 }
 0x2e1   :  { %v876_v17 = vpop.eup %875  ;;  %901 = vtanh.f32 %v605_v14  ;;  %695 = vmatprep.subr.mxu1 %v874_v16 }
 0x2e2   :  { %v878_v18 = vpop.eup %877  ;;  %903 = vtanh.f32 %v603_v15  ;;  %696 = vmatpush1.msra.mxu1 %v876_v17 }
 0x2e3   :  { %v880_v19 = vpop.eup %879  ;;  %697 = vmatprep.subr.mxu1 %v878_v18 }
 0x2e4   :  { %v882_v20 = vpop.eup %881  ;;  %698 = vmatpush1.msra.mxu1 %v880_v19 }
 0x2e5   :  { %v884_v21 = vpop.eup %883  ;;  %699 = vmatprep.subr.mxu1 %v882_v20 }
 0x2e6   :  { %v886_v22 = vpop.eup %885  ;;  %700 = vmatpush1.msra.mxu1 %v884_v21 }
 0x2e7   :  { %v888_v23 = vpop.eup %887  ;;  %701 = vmatprep.subr.mxu1 %v886_v22 }
 0x2e8   :  { %v890_v24 = vpop.eup %889  ;;  %702 = vmatpush1.msra.mxu1 %v888_v23 }
 0x2e9   :  { %v892_v25 = vpop.eup %891  ;;  %703 = vmatprep.subr.mxu1 %v890_v24 }
 0x2ea   :  { %v894_v26 = vpop.eup %893  ;;  %704 = vmatpush1.msra.mxu1 %v892_v25 }
 0x2eb   :  { %v896_v27 = vpop.eup %895  ;;  %705 = vmatprep.subr.mxu1 %v894_v26 }
 0x2ec   :  { %v898_v28 = vpop.eup %897  ;;  %706 = vmatpush1.msra.mxu1 %v896_v27 }
 0x2ed   :  { %v900_v29 = vpop.eup %899  ;;  %707 = vmatprep.subr.mxu1 %v898_v28 }
 0x2ee   :  { %v902_v30 = vpop.eup %901  ;;  %708 = vmatpush1.msra.mxu1 %v900_v29 }
 0x2ef   :  { %v904_v32 = vpop.eup %903  ;;  %709 = vmatprep.subr.mxu1 %v902_v30 }
 0x2f0   :  { %710 = vmatpush1.msra.mxu1 %v904_v32 }
 0x2f1   :  { %801 = vmatmul.mubr.msk.f32.vlgmr.msra.gmra.mxu1 %vm302_vm1, %v665_v31 }
 0x3b1   :  { %v745_v40 = vpop.f32.mrf.mxu1 }
 0x3b2   :  { %v746_v43 = vadd.f32 %v745_v40, %v675_v41 }
 0x3b3   :  { %v747_v42 = vpop.f32.mrf.mxu1 }
 0x3b4   :  { %v748_v44 = vadd.f32 %v747_v42, %v675_v41 }
 0x3b6   :  { %v752_v46 = vcombine.low %v746_v43, %v748_v44 }
 0x3b8   :  { %v759_v47 = vrot.slane %v752_v46, %v758_v45 }
 0x3ba   :  { %v766_v48 = vrot.slane %v759_v47, %v758_v45 }
 0x3bc   :  { %772 = vst.msk [vmem:[%s1176_s9] sm:$0x3] %vm770_vm2, %v766_v48 }

</bundles_post_ra>
